<compile_context>
chip_gen: v7x
topology: tpu7x:2x2x1
jax: 0.10.0
libtpu: 0.0.40
codegen_flags: <defaults>
</compile_context>

<pallas_src>
import functools

import jax
import jax.numpy as jnp
from jax.experimental import pallas as pl
from jax.experimental.pallas import tpu as pltpu

EPS = 1e-5


def _conv_stats_kernel(w_ref, p_ref, y_ref, sum_ref, ssq_ref):
    """Pass 1: yT tile = W[OCp,K] @ pT[K,TM] (bf16 in, f32 acc) + BN partial sums."""
    y = jnp.dot(w_ref[...], p_ref[...], preferred_element_type=jnp.float32)  # [OCp, TM] f32
    y_ref[...] = y

    @pl.when(pl.program_id(0) == 0)
    def _():
        sum_ref[...] = jnp.zeros_like(sum_ref)
        ssq_ref[...] = jnp.zeros_like(ssq_ref)

    # Zero-padded M columns produce y == 0 (no bias), so they add 0 to both sums.
    sum_ref[...] += jnp.sum(y, axis=1, keepdims=True)
    ssq_ref[...] += jnp.sum(y * y, axis=1, keepdims=True)


def _bn_relu_kernel(y_ref, sum_ref, ssq_ref, g_ref, b_ref, o_ref, *, inv_m):
    """Pass 2: per-channel normalize (biased variance, eps), affine, ReLU (all f32)."""
    mean = sum_ref[...] * inv_m
    # One-pass E[y^2] - E[y]^2 in f32; clamp tiny negatives from cancellation.
    # TODO(synk): switch to a Welford-style chunk combine if very large
    #             per-channel means ever make this cancellation-prone.
    var = jnp.maximum(ssq_ref[...] * inv_m - mean * mean, 0.0)
    scale = g_ref[...] * jax.lax.rsqrt(var + EPS)
    shift = b_ref[...] - mean * scale
    o_ref[...] = jnp.maximum(y_ref[...] * scale + shift, 0.0).astype(o_ref.dtype)


def conv_bn_relu(x, weight, bias, gamma, beta, *, stride, padding, block_m=512):
    """x: [N, C, H, W] (NCHW); weight: [OC, C, KH, KW]; groups=1 only.

    `bias` is accepted for API parity with nn.Conv2d but is unused: BatchNorm's
    mean subtraction cancels any per-channel constant exactly.
    """
    del bias
    N, C, H, W = x.shape
    OC, Cw, KH, KW = weight.shape
    assert Cw == C, "only groups=1 implemented"

    OH = (H + 2 * padding - KH) // stride + 1
    OW = (W + 2 * padding - KW) // stride + 1
    M = N * OH * OW
    K = C * KH * KW

    # ---- glue: build the patch matrix directly in transposed [K, M] bf16 ----
    # (cast to bf16 *before* the KH*KW-x inflation; no transpose of the inflated
    #  array is needed in this layout).
    xb = x.astype(jnp.bfloat16)
    xp = jnp.pad(xb, ((0, 0), (0, 0), (padding, padding), (padding, padding)))
    xt = xp.transpose(1, 0, 2, 3)                                  # [C, N, Hp, Wp]
    slabs = []
    for i in range(KH):
        for j in range(KW):
            slabs.append(xt[:, :, i:i + stride * OH:stride, j:j + stride * OW:stride])
    pT = jnp.stack(slabs, axis=1).reshape(K, M)                    # K ordered (c, kh, kw)

    wT = weight.reshape(OC, K).astype(jnp.bfloat16)                # [OC, K]

    # ---- pad to TPU-friendly tiles ----
    OCp = max(8, -(-OC // 8) * 8)                                  # sublane multiple
    block_m = max(128, min(block_m, -(-M // 128) * 128))           # lane multiple
    Mp = -(-M // block_m) * block_m
    pT = jnp.pad(pT, ((0, 0), (0, Mp - M)))
    wT = jnp.pad(wT, ((0, OCp - OC), (0, 0)))
    g2 = jnp.pad(gamma.astype(jnp.float32).reshape(OC, 1), ((0, OCp - OC), (0, 0)))
    b2 = jnp.pad(beta.astype(jnp.float32).reshape(OC, 1), ((0, OCp - OC), (0, 0)))

    grid = (Mp // block_m,)
    vmem_limit = 32 * 1024 * 1024

    # Pass 1: conv (MXU) + per-channel sum / sumsq.  Reduction over the M grid
    # axis -> "arbitrary" (accumulator outputs keep a constant block index).
    yT, csum, csq = pl.pallas_call(
        _conv_stats_kernel,
        out_shape=(
            jax.ShapeDtypeStruct((OCp, Mp), jnp.float32),
            jax.ShapeDtypeStruct((OCp, 1), jnp.float32),
            jax.ShapeDtypeStruct((OCp, 1), jnp.float32),
        ),
        grid=grid,
        in_specs=[
            pl.BlockSpec((OCp, K), lambda i: (0, 0)),
            pl.BlockSpec((K, block_m), lambda i: (0, i)),
        ],
        out_specs=(
            pl.BlockSpec((OCp, block_m), lambda i: (0, i)),
            pl.BlockSpec((OCp, 1), lambda i: (0, 0)),
            pl.BlockSpec((OCp, 1), lambda i: (0, 0)),
        ),
        compiler_params=pltpu.CompilerParams(
            dimension_semantics=("arbitrary",),
            vmem_limit_bytes=vmem_limit,
        ),
    )(wT, pT)

    # Pass 2: normalize + affine + ReLU.  Independent over M tiles -> "parallel"
    # (sharded across the 2 TensorCores on v7x; no-op on v5e/v6e).
    out_t = pl.pallas_call(
        functools.partial(_bn_relu_kernel, inv_m=1.0 / M),
        out_shape=jax.ShapeDtypeStruct((OCp, Mp), jnp.float32),
        grid=grid,
        in_specs=[
            pl.BlockSpec((OCp, block_m), lambda i: (0, i)),
            pl.BlockSpec((OCp, 1), lambda i: (0, 0)),
            pl.BlockSpec((OCp, 1), lambda i: (0, 0)),
            pl.BlockSpec((OCp, 1), lambda i: (0, 0)),
            pl.BlockSpec((OCp, 1), lambda i: (0, 0)),
        ],
        out_specs=pl.BlockSpec((OCp, block_m), lambda i: (0, i)),
        compiler_params=pltpu.CompilerParams(
            dimension_semantics=("parallel",),
            vmem_limit_bytes=vmem_limit,
        ),
    )(yT, csum, csq, g2, b2)

    # Back to NCHW to match the PyTorch module.  (If the consumer accepts the
    # [OC, N, OH, OW] / channel-last form this transpose can be skipped to save
    # a full output read+write.)
    return out_t[:OC, :M].reshape(OC, N, OH, OW).transpose(1, 0, 2, 3)


def _reference(x, weight, bias, gamma, beta, *, stride, padding):
    """Pure-JAX f32 reference: Conv2d + training-mode BatchNorm2d + ReLU (NCHW)."""
    y = jax.lax.conv_general_dilated(
        x, weight, window_strides=(stride, stride),
        padding=[(padding, padding), (padding, padding)],
        dimension_numbers=("NCHW", "OIHW", "NCHW"),
    ) + bias.reshape(1, -1, 1, 1)
    mean = jnp.mean(y, axis=(0, 2, 3), keepdims=True)
    var = jnp.mean((y - mean) ** 2, axis=(0, 2, 3), keepdims=True)
    yn = (y - mean) * jax.lax.rsqrt(var + EPS)
    out = yn * gamma.reshape(1, -1, 1, 1) + beta.reshape(1, -1, 1, 1)
    return jnp.maximum(out, 0.0)


if __name__ == "__main__":
    # CONV_BN_RELU(in_channel=4, ou_channel=8, kernel_size=3, stride=1, padding=1, groups=1)
    N, C, H, W = 2, 4, 16, 16
    OC, KH, KW = 8, 3, 3
    stride, padding = 1, 1

    key = jax.random.PRNGKey(0)
    kx, kw, kb, kg, kbe = jax.random.split(key, 5)
    x = jax.random.normal(kx, (N, C, H, W), dtype=jnp.float32)
    weight = jax.random.normal(kw, (OC, C, KH, KW), dtype=jnp.float32) * 0.1
    bias = jax.random.normal(kb, (OC,), dtype=jnp.float32) * 0.1
    gamma = 1.0 + 0.1 * jax.random.normal(kg, (OC,), dtype=jnp.float32)
    beta = 0.1 * jax.random.normal(kbe, (OC,), dtype=jnp.float32)

    # block_m=128 -> grid=(4,), exercising the tiled/accumulating path.
    out = conv_bn_relu(x, weight, bias, gamma, beta,
                       stride=stride, padding=padding, block_m=128)
    out = jax.block_until_ready(out)

    ref = _reference(x, weight, bias, gamma, beta, stride=stride, padding=padding)
    assert out.shape == (N, OC, H, W), out.shape
    # Tolerance accounts for bf16 MXU inputs (f32 accumulation / f32 epilogue).
    assert jnp.allclose(out, ref, atol=5e-2, rtol=5e-2), "mismatch vs reference"

    print("KERNEL_OK")
</pallas_src>

<mosaic_0001>
module attributes {stable_mosaic.version = 11 : i64} {
  func.func @_conv_stats_kernel(%arg0: i32, %arg1: memref<8x36xbf16, #tpu.memory_space<vmem>>, %arg2: memref<36x128xbf16, #tpu.memory_space<vmem>>, %arg3: memref<8x128xf32, #tpu.memory_space<vmem>>, %arg4: memref<8x1xf32, #tpu.memory_space<vmem>>, %arg5: memref<8x1xf32, #tpu.memory_space<vmem>>) attributes {dimension_semantics = [#tpu.dimension_semantics<arbitrary>], iteration_bounds = array<i64: 4>, scalar_prefetch = 0 : i64, scratch_operands = 0 : i64, tpu.core_type = #tpu.core_type<tc>, window_params = [{pipeline_mode = #tpu.pipeline_mode<synchronous>, transform_indices = @transform_0, window_bounds = array<i64: 8, 36>}, {transform_indices = @transform_1, window_bounds = array<i64: 36, 128>}, {transform_indices = @transform_2, window_bounds = array<i64: 8, 128>}, {pipeline_mode = #tpu.pipeline_mode<synchronous>, transform_indices = @transform_3, window_bounds = array<i64: 8, 1>}, {pipeline_mode = #tpu.pipeline_mode<synchronous>, transform_indices = @transform_4, window_bounds = array<i64: 8, 1>}]} {
    %c0 = arith.constant 0 : index
    %c0_0 = arith.constant 0 : index
    %0 = vector.load %arg1[%c0, %c0_0] : memref<8x36xbf16, #tpu.memory_space<vmem>>, vector<8x36xbf16>
    %c0_1 = arith.constant 0 : index
    %c0_2 = arith.constant 0 : index
    %1 = vector.load %arg2[%c0_1, %c0_2] : memref<36x128xbf16, #tpu.memory_space<vmem>>, vector<36x128xbf16>
    %cst = arith.constant dense<0.000000e+00> : vector<8x128xf32>
    %2 = tpu.matmul %0, %1, %cst {dimension_numbers = #tpu.dot_dimension_numbers<[1], [0], [0], [1], [0, 0, 1, 1], [], []>} : vector<8x36xbf16>, vector<36x128xbf16>, vector<8x128xf32> -> vector<8x128xf32>
    %c0_3 = arith.constant 0 : index
    %c0_4 = arith.constant 0 : index
    %3 = vector.load %arg3[%c0_3, %c0_4] : memref<8x128xf32, #tpu.memory_space<vmem>>, vector<8x128xf32>
    tpu.vector_store %arg3[%c0_3, %c0_4], %2 {strides = array<i32>} : memref<8x128xf32, #tpu.memory_space<vmem>>, vector<8x128xf32>,
    %c0_i32 = arith.constant 0 : i32
    %4 = arith.cmpi eq, %arg0, %c0_i32 : i32
    %5 = arith.extui %4 : i1 to i32
    %c0_i32_5 = arith.constant 0 : i32
    %6 = arith.cmpi ne, %5, %c0_i32_5 : i32
    scf.if %6 {
      %cst_16 = arith.constant 0.000000e+00 : f32
      %18 = vector.broadcast %cst_16 : f32 to vector<8x1xf32>
      %c0_17 = arith.constant 0 : index
      %c0_18 = arith.constant 0 : index
      %19 = vector.load %arg4[%c0_17, %c0_18] : memref<8x1xf32, #tpu.memory_space<vmem>>, vector<8x1xf32>
      tpu.vector_store %arg4[%c0_17, %c0_18], %18 {strides = array<i32>} : memref<8x1xf32, #tpu.memory_space<vmem>>, vector<8x1xf32>,
      %cst_19 = arith.constant 0.000000e+00 : f32
      %20 = vector.broadcast %cst_19 : f32 to vector<8x1xf32>
      %c0_20 = arith.constant 0 : index
      %c0_21 = arith.constant 0 : index
      %21 = vector.load %arg5[%c0_20, %c0_21] : memref<8x1xf32, #tpu.memory_space<vmem>>, vector<8x1xf32>
      tpu.vector_store %arg5[%c0_20, %c0_21], %20 {strides = array<i32>} : memref<8x1xf32, #tpu.memory_space<vmem>>, vector<8x1xf32>,
    } else {
    }
    %c0_6 = arith.constant 0 : index
    %c0_7 = arith.constant 0 : index
    %7 = vector.load %arg4[%c0_6, %c0_7] : memref<8x1xf32, #tpu.memory_space<vmem>>, vector<8x1xf32>
    %cst_8 = arith.constant dense<0.000000e+00> : vector<8xf32>
    %8 = vector.multi_reduction <add>, %2, %cst_8 [1] : vector<8x128xf32> to vector<8xf32>
    %9 = vector.shape_cast %8 : vector<8xf32> to vector<8x1xf32>
    %10 = arith.addf %7, %9 : vector<8x1xf32>
    %c0_9 = arith.constant 0 : index
    %c0_10 = arith.constant 0 : index
    %11 = vector.load %arg4[%c0_9, %c0_10] : memref<8x1xf32, #tpu.memory_space<vmem>>, vector<8x1xf32>
    tpu.vector_store %arg4[%c0_9, %c0_10], %10 {strides = array<i32>} : memref<8x1xf32, #tpu.memory_space<vmem>>, vector<8x1xf32>,
    %c0_11 = arith.constant 0 : index
    %c0_12 = arith.constant 0 : index
    %12 = vector.load %arg5[%c0_11, %c0_12] : memref<8x1xf32, #tpu.memory_space<vmem>>, vector<8x1xf32>
    %13 = arith.mulf %2, %2 : vector<8x128xf32>
    %cst_13 = arith.constant dense<0.000000e+00> : vector<8xf32>
    %14 = vector.multi_reduction <add>, %13, %cst_13 [1] : vector<8x128xf32> to vector<8xf32>
    %15 = vector.shape_cast %14 : vector<8xf32> to vector<8x1xf32>
    %16 = arith.addf %12, %15 : vector<8x1xf32>
    %c0_14 = arith.constant 0 : index
    %c0_15 = arith.constant 0 : index
    %17 = vector.load %arg5[%c0_14, %c0_15] : memref<8x1xf32, #tpu.memory_space<vmem>>, vector<8x1xf32>
    tpu.vector_store %arg5[%c0_14, %c0_15], %16 {strides = array<i32>} : memref<8x1xf32, #tpu.memory_space<vmem>>, vector<8x1xf32>,
    return
  }
  func.func @transform_0(%arg0: i32) -> (i32, i32) {
    %c0_i32 = arith.constant 0 : i32
    %c0_i32_0 = arith.constant 0 : i32
    %c0_i32_1 = arith.constant 0 : i32
    return %c0_i32, %c0_i32_0 : i32, i32
  }
  func.func @transform_1(%arg0: i32) -> (i32, i32) {
    %c0_i32 = arith.constant 0 : i32
    %c0_i32_0 = arith.constant 0 : i32
    return %c0_i32, %arg0 : i32, i32
  }
  func.func @transform_2(%arg0: i32) -> (i32, i32) {
    %c0_i32 = arith.constant 0 : i32
    %c0_i32_0 = arith.constant 0 : i32
    return %c0_i32, %arg0 : i32, i32
  }
  func.func @transform_3(%arg0: i32) -> (i32, i32) {
    %c0_i32 = arith.constant 0 : i32
    %c0_i32_0 = arith.constant 0 : i32
    %c0_i32_1 = arith.constant 0 : i32
    return %c0_i32, %c0_i32_0 : i32, i32
  }
  func.func @transform_4(%arg0: i32) -> (i32, i32) {
    %c0_i32 = arith.constant 0 : i32
    %c0_i32_0 = arith.constant 0 : i32
    %c0_i32_1 = arith.constant 0 : i32
    return %c0_i32, %c0_i32_0 : i32, i32
  }
}

</mosaic_0001>

<bundles_post_ra>
// kernel: tpu_custom_call.1
= control target key start
LH: loop header
LB: loop body
LE: loop exit
PB: predicated region body
PF: predicated region fallthrough
CT: control target
= control target key end

     0   :  { %10 = vsyncpa [#allocation3], 0  ;;  %s894_s0 = inlined_call_operand.hbm [shape: bf16[8,36], index: 0, kind: input, shape index: {}]   ;;  %s895_s1 = inlined_call_operand.hbm [shape: bf16[36,512], index: 1, kind: input, shape index: {}]   ;;  %s896_s2 = inlined_call_operand.hbm [shape: f32[8,512], index: 2, kind: output, shape index: {0}]   ;;  %s897_s3 = inlined_call_operand.vmem [shape: f32[8,1], index: 3, kind: output, shape index: {1}]   ;;  %s898_s4 = inlined_call_operand.vmem [shape: f32[8,1], index: 4, kind: output, shape index: {2}]  }
   0x1   :  { %11 = vsyncpa [#allocation6], 0 }
   0x2   :  { %13 = vsyncpa [#allocation6 + $0x1], 0 }
   0x3   :  { %14 = vsyncpa [#allocation4], 0 }
   0x4   :  { %16 = vsyncpa [#allocation4 + $0x1], 0  ;;  %s684_s15 = smov 0   ;;  %s686_s16 = smov 0  }
   0x5   :  { %s688_s17 = smov 0   ;;  %s690_s18 = smov 0  }
   0x6 LB: > { %s705_s19 = sadd.s32 4294967295, %s648_s18   ;;  %s421_s20 = sadd.s32 4294967294, %s648_s18   ;;  %s648_s18 = sphi %s690_s18, %s923_s18   ;;  %s644_s17 = sphi %s688_s17, %s922_s17   ;;  %s640_s16 = sphi %s686_s16, %s921_s16   ;;  %s636_s15 = sphi %s684_s15, %s920_s15  }
   0x7   : > { %s709_s21 = sadd.s32 1, %s648_s18   ;;  %s50_s22 = sadd.s32 1, %s644_s17 }
   0x8   : > { %s47_s23 = ssub.s32 %s648_s18, %s709_s21  ;;  %p57_p0 = scmp.ne.s32.totalorder %s644_s17, %s640_s16 }
   0x9   : > { %p48_p1 = scmp.eq.s32.totalorder %s47_s23, 0  ;;  %p58_p2 = scmp.eq.s32.totalorder %s648_s18, 0 }
   0xa   : > { %p63_p3 = scmp.ne.s32.totalorder %s640_s16, %s636_s15  ;;  %p899_p4 = scmp.eq.s32.totalorder %s705_s19, 0 }
   0xb   : > { %s721_s24 = scalar_select %p48_p1, %s644_s17, %s50_s22  }
   0xc   : > { %p723_p5 = por %p58_p2, %p57_p0  ;;  %p729_p6 = por %p899_p4, %p63_p3 }
   0xd   : > { %p87_p7 = scmp.eq.s32.totalorder %s705_s19, 3  ;;  %p93_p8 = scmp.eq.s32.totalorder %s421_s20, 3 }
   0xe   : > { %s905_s26 = scalar_select %p729_p6, 1, 0 }
   0xf   : > { %p422_p9 = scmp.ge.s32.totalorder %s648_s18, 1  ;;  %p142_p10 = scmp.lt.s32.totalorder %s648_s18, 5 }
  0x10   : > { %p736_p11 = por %p87_p7, %p57_p0  ;;  %p740_p12 = por %p93_p8, %p63_p3 }
  0x11   : > { %p744_p13 = pnand %p422_p9, %p142_p10  ;;  %s650_s30 = smov [#allocation2]  }
  0x12   : > { %s906_s27 = scalar_select %p736_p11, 1, 0 }
  0x13   : > { %s907_s28 = scalar_select %p740_p12, 1, 0 }
  0x14   : > { %s908_s29 = scalar_select %p744_p13, 1, 0 }
  0x15   : > { %p462_p2 = pneg %p744_p13  ;;  %s155_s5 = sshll.u32 %s650_s30, 4  ;;  %s156_s5 = int_to_ptr.vmem [resolvable:$true] %s155_s5 }
  0x16   : > { %p475_p4 = scmp.lt.s32.totalorder %s648_s18, 4  ;;  %p909_p0 = scmp.eq.s32.totalorder %s705_s19, 0 }
  0x17   : > { %s166_s7 = sand.u32 1, %s644_s17   ;;  %s520_s12 = scalar_lea.hbm %s894_s0, 64 }
  0x18   : > { %p754_p7 = pnand %p462_p2, %p909_p0  ;;  %p761_p3 = pnand %p475_p4, %p723_p5 }
  0x19   : > { %s452_s9 = smul.u32 20, %s166_s7  ;;  %p521_p8 = scmp.ne.s32.totalorder %s894_s0, %s520_s12 }
  0x1a   : > { %s911_s8 = scalar_select %p761_p3, 1, 0 }
  0x1b   : > { %p522_p9 = pneg %p754_p7  ;;  %p527_p4 = scmp.lt.u32.totalorder %s520_s12, %s894_s0 }
  0x1d   : > { %p523_p10 = pnand %p522_p9, %p521_p8 }
  0x1f   : > { %p524_p2 = pneg %p523_p10 }
  0x21   : > { %p529_p5 = pnand %p527_p4, %p524_p2 }
  0x23   : > { %532 = shalt.err (!%p529_p5)
}
  0x24   : > { %s533_s23 = scalar_lea.vmem %s156_s5, 64  ;;  %p541_p11 = scmp.lt.s32.totalorder %s156_s5, %s156_s5 }
  0x25   : > { %p534_p0 = scmp.ne.s32.totalorder %s156_s5, %s533_s23  ;;  %p542_p6 = scmp.lt.s32.totalorder %s533_s23, %s533_s23 }
  0x27   : > { %p536_p1 = pnand %p534_p0, %p522_p9  ;;  %p543_p13 = por %p542_p6, %p541_p11 }
  0x29   : > { %p537_p12 = pneg %p536_p1 }
  0x2b   : > { %p544_p3 = pnand %p543_p13, %p537_p12 }
  0x2d   : > { %547 = shalt.err (!%p544_p3)
}
  0x2e   : > { %465 = dma.hbm_to_vmem [thread:$0]  (!%p754_p7), %s894_s0, 64, %s156_s5, [#allocation3]  }
  0x2f   : > { %s425_s10 = sshll.u32 %s648_s18, 6  ;;  %s170_s11 = scalar_lea.vmem [#allocation5], %s452_s9 }
  0x30   : > { %s176_s12 = sshll.u32 %s170_s11, 4  ;;  %s785_s20 = scalar_lea.hbm %s895_s1, %s425_s10  ;;  %s787_s12 = int_to_ptr.vmem [resolvable:$true] %s176_s12 }
  0x31   : > { %s789_s6 = scalar_lea.sflag [#allocation6], %s166_s7  ;;  %s548_s22 = scalar_lea.hbm %s785_s20, 320 }
  0x32   : > { %p549_p6 = scmp.ne.s32.totalorder %s785_s20, %s548_s22  ;;  %p912_p11 = scmp.ne.s32.totalorder %s911_s8, 0 }
  0x33   : > { %s553_s23 = scalar_lea.hbm %s895_s1, 1280  ;;  %p554_p7 = scmp.lt.u32.totalorder %s785_s20, %s895_s1 }
  0x34   : > { %p550_p12 = pneg %p912_p11  ;;  %p555_p3 = scmp.lt.u32.totalorder %s553_s23, %s548_s22 }
  0x35   : > { %p557_p9 = scmp.lt.u32.totalorder %s548_s22, %s785_s20 }
  0x36   : > { %p551_p13 = pnand %p550_p12, %p549_p6  ;;  %p556_p8 = por %p555_p3, %p554_p7 }
  0x38   : > { %p552_p1 = pneg %p551_p13  ;;  %p558_p10 = por %p557_p9, %p556_p8 }
  0x3a   : > { %p559_p2 = pnand %p558_p10, %p552_p1 }
  0x3c   : > { %562 = shalt.err (!%p559_p2)
}
  0x3d   : > { %s563_s7 = scalar_lea.vmem %s787_s12, 320  ;;  %s651_s10 = smov [#allocation5]  }
  0x3e   : > { %p564_p4 = scmp.ne.s32.totalorder %s787_s12, %s563_s7  ;;  %s568_s11 = sshll.u32 %s651_s10, 4  ;;  %s569_s11 = int_to_ptr.vmem [resolvable:$false] %s568_s11 }
  0x3f   : > { %s570_s13 = scalar_lea.vmem %s569_s11, 640  ;;  %p571_p6 = scmp.lt.s32.totalorder %s787_s12, %s569_s11 }
  0x40   : > { %p566_p5 = pnand %p564_p4, %p550_p12  ;;  %p572_p13 = scmp.lt.s32.totalorder %s570_s13, %s563_s7 }
  0x42   : > { %p567_p0 = pneg %p566_p5  ;;  %p573_p7 = por %p572_p13, %p571_p6 }
  0x44   : > { %p574_p3 = pnand %p573_p7, %p567_p0 }
  0x46   : > { %577 = shalt.err (!%p574_p3)
}
  0x47   : > { %s652_s14 = smov 256   ;;  %s653_s22 = smov 64  }
  0x48   : > { %s654_s5 = smov 4   ;;  %p913_p12 = scmp.ne.s32.totalorder %s908_s29, 0 }
  0x49   : > { %469 = dma.hbm_to_vmem [thread:$0]  (!%p912_p11), %s785_s20, 320, %s787_s12, %s789_s6, %s652_s14, %s653_s22, %s654_s5  }
  0x4a   : > { %188 = sbr.rel (%p913_p12) target bundleno = 464 (0x1d0), region = 28  ;;  %p914_p1 = scmp.eq.s32.totalorder (!%p913_p12), %s705_s19, 0 }
  0x51   : > { %623 = dma.done.wait (%p914_p1), [#allocation3], 64   ;;  %p915_p8 = pmov %p914_p1 }
  0x52   : > { %s824_s9 = sand.u32 1, %s640_s16   ;;  %p916_p9 = scmp.ne.s32.totalorder %s905_s26, 0 }
  0x53   : > { %625 = vsyncadd (%p915_p8), [#allocation3], 4294967232  ;;  %s453_s23 = smul.u32 20, %s824_s9  ;;  %s195_s25 = scalar_lea.sflag [#allocation6], %s824_s9 }
  0x55   : > { %s198_s30 = scalar_lea.vmem [#allocation5], %s453_s23 }
  0x56   : > { %627 = dma.done.wait (%p916_p9), %s195_s25, 320  }
  0x57   : > { %629 = vsyncadd (%p916_p9), %s195_s25, 4294966976  ;;  %v655_v0 = vmov 0.0   ;;  %vm656_vm0 = vmmov 0   ;;  %v517_v1 = vld [vmem:[%s198_s30] sm:$0xff]   ;;  %v518_v2 = vld [vmem:[%s198_s30 + $0x8] sm:$0xff]   ;;  %vm249_vm1 = vcmask 1041408  }
  0x58   : > { %442 = vmatprep.subr.bf16.mxu0 %v655_v0  ;;  %448 = vmatprep.mubr.msk.bf16.mxu0 %vm656_vm0, %v655_v0  ;;  %v519_v3 = vld [vmem:[%s198_s30 + $0x10] ss:$0 sps:$4 sm:$0x33]   ;;  %v224_v5 = vld [vmem:[#allocation2] sm:$0xf]  ;;  %vm245_vm2 = vcmask 293888  }
  0x59   : > { %443 = vmatpush3.bf16.msra.mxu0 %v517_v1  ;;  %v251_v4 = vsel %vm249_vm1, %v519_v3, 0  ;;  %s428_s26 = sshll.u32 %s824_s9, 3  ;;  %p917_p11 = scmp.ne.s32.totalorder %s705_s19, 0 }
  0x5a   : > { %444 = vmatprep.subr.bf16.mxu0 %v655_v0  ;;  %s218_s29 = scalar_lea.vmem [#allocation7], %s428_s26  ;;  %vm298_vm3 = vcmask (!%p917_p11), 7168   ;;  %v657_v10 = vmov (!%p917_p11), 0.0  }
  0x5b   : > { %299 = vst.msk [vmem:[%s897_s3] sm:$0xff] (!%p917_p11), %vm298_vm3, %v657_v10  ;;  %300 = vst.msk [vmem:[%s898_s4] sm:$0xff] (!%p917_p11), %vm298_vm3, %v657_v10 }
  0x5d   : > { %445 = vmatpush3.bf16.msra.mxu0 %v518_v2 }
  0x5e   : > { %446 = vmatprep.subr.bf16.mxu0 %v655_v0 }
  0x61   : > { %447 = vmatpush3.bf16.msra.mxu0 %v251_v4 }
  0x64   : > { %449 = vmatmul.mubr.msk.bf16.vlgmr.msra.gmra.mrb[0].mxu0 %vm245_vm2, %v224_v5 }
 0x134   : > { %297 = sbr.rel (%p917_p11) target bundleno = 315 (0x13b), region = 40 }
 0x137   : > { %v287_v6 = vpop.f32.mrb[0].mxu0 }
 0x138   : > { %293 = vst [vmem:[%s218_s29] sm:$0xff] %v287_v6  ;;  %v450_v7 = vpop.f32.mrb[1].mxu0 }
 0x139   : > { %v290_v8 = vpop.f32.mrb[2].mxu0 }
 0x13a   : > { %v451_v9 = vpop.f32.mrb[3].mxu0 }
 0x13b PF: > { %302 = vadd.xlane.f32.xlu0 %v287_v6  ;;  %v308_v11 = vmul.f32 %v287_v6, %v287_v6  ;;  %s435_s7 = sshll.u32 %s705_s19, 7  ;;  %s327_s10 = sshll.u32 %s218_s29, 4  ;;  %s328_s10 = int_to_ptr.vmem [resolvable:$true] %s327_s10 }
 0x13c   : > { %s845_s14 = scalar_lea.hbm %s896_s2, %s435_s7  ;;  %s314_s22 = scalar_lea.sflag [#allocation4], %s824_s9 }
 0x13d   : > { %s578_s5 = scalar_lea.vmem %s328_s10, 128  ;;  %p918_p2 = scmp.ne.s32.totalorder %s906_s27, 0 }
 0x13e   : > { %p579_p10 = scmp.ne.s32.totalorder %s328_s10, %s578_s5  ;;  %s658_s23 = smov [#allocation7]  }
 0x13f   : > { %309 = vadd.xlane.f32.xlu0 %v308_v11  ;;  %s582_s25 = sshll.u32 %s658_s23, 4  ;;  %s583_s25 = int_to_ptr.vmem [resolvable:$false] %s582_s25 }
 0x140   : > { %p580_p4 = pnand %p579_p10, %p918_p2  ;;  %s584_s30 = scalar_lea.vmem %s583_s25, 256 }
 0x141   : > { %p585_p0 = scmp.lt.s32.totalorder %s328_s10, %s583_s25  ;;  %p586_p6 = scmp.lt.s32.totalorder %s584_s30, %s578_s5 }
 0x142   : > { %p581_p5 = pneg %p580_p4 }
 0x143   : > { %p587_p13 = por %p586_p6, %p585_p0 }
 0x145   : > { %p588_p7 = pnand %p587_p13, %p581_p5 }
 0x147   : > { %591 = shalt.err (!%p588_p7)
}
 0x148   : > { %s592_s19 = scalar_lea.hbm %s845_s14, 128  ;;  %s596_s29 = scalar_lea.hbm %s896_s2, 512 }
 0x149   : > { %p593_p3 = scmp.ne.s32.totalorder %s845_s14, %s592_s19  ;;  %p597_p8 = scmp.lt.u32.totalorder %s845_s14, %s896_s2 }
 0x14a   : > { %p598_p9 = scmp.lt.u32.totalorder %s596_s29, %s592_s19  ;;  %p600_p10 = scmp.lt.u32.totalorder %s592_s19, %s845_s14 }
 0x14b   : > { %p594_p12 = pnand %p593_p3, %p918_p2 }
 0x14c   : > { %p599_p11 = por %p598_p9, %p597_p8 }
 0x14d   : > { %p595_p1 = pneg %p594_p12 }
 0x14e   : > { %p601_p4 = por %p600_p10, %p599_p11 }
 0x150   : > { %p602_p5 = pnand %p601_p4, %p595_p1 }
 0x152   : > { %605 = shalt.err (!%p602_p5)
}
 0x153   : > { %460 = dma.vmem_to_hbm [thread:$0]  (%p918_p2), %s328_s10, 128, %s845_s14, %s314_s22   ;;  %v301_v12 = vld [vmem:[%s897_s3] sm:$0xff]  ;;  %vm305_vm4 = vcmask 7168  }
 0x154   : > { %v307_v15 = vld [vmem:[%s898_s4] sm:$0xff] }
 0x1c8   : > { %v303_v13 = vpop.xlane.xlu0 %302 }
 0x1c9   : > { %v304_v14 = vadd.f32 %v303_v13, %v301_v12 }
 0x1cb   : > { %306 = vst.msk [vmem:[%s897_s3] sm:$0xff] %vm305_vm4, %v304_v14 }
 0x1cc   : > { %v310_v16 = vpop.xlane.xlu0 %309 }
 0x1cd   : > { %v311_v17 = vadd.f32 %v310_v16, %v307_v15 }
 0x1cf   : > { %312 = vst.msk [vmem:[%s898_s4] sm:$0xff] %vm305_vm4, %v311_v17 }
 0x1d0 PF: > { %p477_p2 = scmp.ge.s32.totalorder %s648_s18, 2  ;;  %s351_s10 = sand.u32 1, %s636_s15  }
 0x1d1   : > { %p919_p0 = scmp.ne.s32.totalorder %s907_s28, 0  ;;  %s352_s14 = scalar_lea.sflag [#allocation4], %s351_s10 }
 0x1d3   : > { %p471_p6 = pnand %p477_p2, %p919_p0 }
 0x1d5   : > { %631 = dma.done.wait (!%p471_p6), %s352_s14, 128  }
 0x1d6   : > { %633 = vsyncadd (!%p471_p6), %s352_s14, 4294967168  ;;  %p19_p13 = scmp.ge.s32.totalorder %s709_s21, 6   ;;  %s920_s15 = smov %s640_s16 }
 0x1d7   : > { %s921_s16 = smov %s644_s17  ;;  %s922_s17 = smov %s721_s24 }
 0x1d8   : > { %s923_s18 = smov %s709_s21  ;;  %21 = sbr.rel (!%p19_p13) target bundleno = 6 (0x6), region = 98 }
 0x1df   :  { %357 = vsyncpa [#allocation3], 1 }
 0x1e0   :  { %359 = vsyncpa [#allocation3 + $0x1], 1 }
 0x1e1   :  { %360 = vsyncpa [#allocation6], 1 }
 0x1e2   :  { %362 = vsyncpa [#allocation6 + $0x1], 1 }
 0x1e3   :  { %363 = vsyncpa [#allocation4], 1 }
 0x1e4   :  { %365 = vsyncpa [#allocation4 + $0x1], 1 }

</bundles_post_ra>
